<compile_context>
chip_gen: v7x
topology: tpu7x:2x2x1
jax: 0.10.0
libtpu: 0.0.40
codegen_flags: <defaults>
</compile_context>

<pallas_src>
import functools

import jax
import jax.numpy as jnp
from jax.experimental import pallas as pl
from jax.experimental.pallas import tpu as pltpu


def _attn_kernel(src_ref, mem_ref, sent_ref, w_ref, out_h_ref, out_a_ref):
    # Block shapes per grid step:
    #   src_ref  : (TB, D)        mem_ref  : (TB, S, D)   (original dtypes)
    #   sent_ref : (TB, S)        w_ref    : (2D, D) bf16 (grid-invariant)
    #   out_h_ref: (TB, D) f32    out_a_ref: (TB, S_pad) f32, S_pad = roundup(S, 128)
    tb, s, d = mem_ref.shape
    s_pad = out_a_ref.shape[-1]

    # Elementwise math stays f32 (v5e has no bf16 VALU/EUP). For f32 inputs the
    # casts are no-ops; for bf16 inputs they are VPU work hidden under the DMA.
    q = src_ref[...].astype(jnp.float32)            # (TB, D)
    mb = mem_ref[...].astype(jnp.float32)           # (TB, S, D)
    sent = sent_ref[...].astype(jnp.float32)        # (TB, S)

    # --- dot-attention scores: scores[b, s] = <q[b], mb[b, s]> ---------------
    # VPU multiply + cross-lane reduce; avoids TB tiny M=1 MXU matmuls whose
    # RHS-push / result-drain cost would not hide under the memory_bank DMA.
    scores = jnp.sum(q[:, None, :] * mb, axis=-1)   # (TB, S) f32

    # --- softmax * sent_align with a single normalization --------------------
    # softmax(x)*sent / sum(softmax(x)*sent) == exp(x-m)*sent / sum(exp(x-m)*sent)
    # (EUP approx reciprocal: rows sum to 1 only to ~1e-3/1e-4 relative error;
    #  an all-zero sent row yields inf/NaN instead of the reference's 0/0 NaN.)
    m = jnp.max(scores, axis=-1, keepdims=True)
    p = jnp.exp(scores - m) * sent                  # (TB, S) f32
    p = p * pl.reciprocal(jnp.sum(p, axis=-1, keepdims=True), approx=True)

    # --- context: c[b] = sum_s p[b, s] * mb[b, s] (VPU + sublane reduce) -----
    c = jnp.sum(p[:, :, None] * mb, axis=1)         # (TB, D) f32

    # --- output projection: tanh([c, q] @ w_out.T) as one M=TB GEMM ----------
    cq = jnp.concatenate([c, q], axis=-1).astype(jnp.bfloat16)   # (TB, 2D)
    h = jnp.dot(cq, w_ref[...], preferred_element_type=jnp.float32)
    out_h_ref[...] = jnp.tanh(h).astype(out_h_ref.dtype)

    # Lane-dense align store: pad columns [S, S_pad) with zeros (sliced off
    # again in the wrapper).  Static branch.
    if s_pad > s:
        p = jnp.concatenate([p, jnp.zeros((tb, s_pad - s), jnp.float32)], axis=-1)
    out_a_ref[...] = p.astype(out_a_ref.dtype)


def _round_up(x, m):
    return ((x + m - 1) // m) * m


@functools.partial(jax.jit, static_argnames=("block_b",))
def w2word_global_attention(source, memory_bank, sent_align, w_out, *, block_b=None):
    """source: [B, D], memory_bank: [B, S, D], sent_align: [B, S],
    w_out: [D, 2D] (PyTorch nn.Linear(2*dim, dim, bias=False).weight layout).
    Returns (attn_h [B, D], align_vectors [B, S])."""
    B, S, D = memory_bank.shape
    assert source.shape == (B, D)
    assert sent_align.shape == (B, S)
    assert w_out.shape == (D, 2 * D)

    S_pad = _round_up(S, 128)                  # lane-dense align_vectors tile
    itemsize = memory_bank.dtype.itemsize

    # --- batch tile TB: ~8 MiB of memory_bank per block ----------------------
    # 8 MiB keeps (double-buffered block + in-kernel f32 temporaries) well
    # inside v7x's 64 MiB VMEM while amortizing the ~0.35 us per-step pipeline
    # overhead at v6e/v7x HBM bandwidth; on v5e it is simply a bigger safe block.
    if block_b is None:
        row_bytes = max(S * D * itemsize, 1)
        budget = 8 * 1024 * 1024
        block_b = min(256, max(8, ((budget // row_bytes) // 8) * 8))  # 256 fills an MXU pass
    TB = max(1, int(block_b))
    if B <= TB:
        TB = B                                 # single exact block, no OOB at all
    else:
        TB = max(8, (TB // 8) * 8)             # sublane-aligned; last block reads OOB
    grid_b = pl.cdiv(B, TB)                    # rows; garbage rows are sliced off
    Bp = grid_b * TB                           # outputs over-allocated, sliced below

    # Fused output-projection weight: [c, q] @ w_out.T  ->  (2D, D) bf16 MXU RHS.
    w_t = jnp.transpose(w_out).astype(jnp.bfloat16)

    # Explicit VMEM budget: double-buffered blocks + block-sized f32 temporaries
    # from the VPU formulation + headroom.  (v5e's default scoped limit is only
    # 16 MiB; v7x physical VMEM is 64 MiB.)
    f32_blk = TB * S * D * 4
    mem_blk = TB * S * D * itemsize
    small_blks = (TB * D * source.dtype.itemsize + TB * S * sent_align.dtype.itemsize
                  + TB * D * 4 + TB * S_pad * 4 + 2 * D * D * 2)
    vmem_limit = int(min(max(2 * (mem_blk + small_blks) + 2 * f32_blk + (8 << 20),
                             48 << 20), 100 << 20))

    grid_spec = pltpu.PrefetchScalarGridSpec(
        num_scalar_prefetch=0,
        grid=(grid_b,),
        in_specs=[
            pl.BlockSpec((TB, D), lambda b: (b, 0)),        # source
            pl.BlockSpec((TB, S, D), lambda b: (b, 0, 0)),  # memory_bank (big DMA)
            pl.BlockSpec((TB, S), lambda b: (b, 0)),        # sent_align
            # grid-invariant weight: constant index_map -> fetched once.
            # (pipeline_mode=pl.Buffered(1) would drop its unused 2nd buffer;
            #  left at default for compile safety — negligible for D <= 1024.)
            pl.BlockSpec((2 * D, D), lambda b: (0, 0)),
        ],
        out_specs=[
            pl.BlockSpec((TB, D), lambda b: (b, 0)),        # attn_h
            pl.BlockSpec((TB, S_pad), lambda b: (b, 0)),    # align (lane-dense)
        ],
    )

    # TODO(synk): for very long src_len add a second ('arbitrary') grid axis over S
    # with an online-softmax/context accumulator (flash style) so VMEM stays flat
    # on v7x; and consider pltpu.CORE_PARALLEL on the batch axis there if plain
    # "parallel" does not shard the grid across the two TensorCores.
    attn_h, align = pl.pallas_call(
        _attn_kernel,
        out_shape=(
            jax.ShapeDtypeStruct((Bp, D), jnp.float32),
            jax.ShapeDtypeStruct((Bp, S_pad), jnp.float32),
        ),
        grid_spec=grid_spec,
        compiler_params=pltpu.CompilerParams(
            dimension_semantics=("parallel",),
            vmem_limit_bytes=vmem_limit),
    )(source, memory_bank, sent_align, w_t)

    return attn_h[:B], align[:B, :S]


def _reference(source, memory_bank, sent_align, w_out):
    # Pure-JAX f32 mirror of the PyTorch forward (dot / softmax / output_attn_h).
    B, S, D = memory_bank.shape
    q = source[:, None, :]                                    # [B,1,D]
    align = jnp.einsum('btd,bsd->bts', q, memory_bank)        # [B,1,S]
    av = jax.nn.softmax(align, axis=-1)
    av = av * sent_align[:, None, :]
    av = av / jnp.sum(av, axis=-1, keepdims=True)
    c = jnp.einsum('bts,bsd->btd', av, memory_bank)           # [B,1,D]
    concat = jnp.concatenate([c, q], axis=-1).reshape(B, 2 * D)
    attn_h = jnp.tanh(concat @ w_out.T)                       # [B,D]
    return attn_h, av.reshape(B, S)


if __name__ == "__main__":
    key = jax.random.PRNGKey(0)
    B, S, D = 2, 8, 32

    k1, k2, k3, k4 = jax.random.split(key, 4)
    source = jax.random.normal(k1, (B, D), dtype=jnp.float32)
    memory_bank = jax.random.normal(k2, (B, S, D), dtype=jnp.float32)
    # sentence alignment scores: positive (like attention probs)
    sent_align = jax.nn.softmax(
        jax.random.normal(k3, (B, S), dtype=jnp.float32), axis=-1)
    # deterministic init of linear_out weight (nn.Linear(2*dim, dim, bias=False))
    bound = 1.0 / jnp.sqrt(2.0 * D)
    w_out = jax.random.uniform(k4, (D, 2 * D), minval=-bound, maxval=bound,
                               dtype=jnp.float32)

    attn_h, align_vectors = w2word_global_attention(source, memory_bank,
                                                    sent_align, w_out)
    jax.block_until_ready((attn_h, align_vectors))

    ref_h, ref_a = _reference(source, memory_bank, sent_align, w_out)
    assert attn_h.shape == (B, D) and align_vectors.shape == (B, S)
    # bf16 projection operands + EUP approx reciprocal vs. a pure-f32 reference
    assert jnp.allclose(attn_h, ref_h, atol=2e-2, rtol=2e-2)
    assert jnp.allclose(align_vectors, ref_a, atol=2e-2, rtol=2e-2)

    print("KERNEL_OK")
</pallas_src>

<mosaic_0001>
module attributes {stable_mosaic.version = 11 : i64} {
  func.func @_attn_kernel(%arg0: i32, %arg1: memref<2x32xf32, #tpu.memory_space<vmem>>, %arg2: memref<2x8x32xf32, #tpu.memory_space<vmem>>, %arg3: memref<2x8xf32, #tpu.memory_space<vmem>>, %arg4: memref<64x32xbf16, #tpu.memory_space<vmem>>, %arg5: memref<2x32xf32, #tpu.memory_space<vmem>>, %arg6: memref<2x128xf32, #tpu.memory_space<vmem>>) attributes {dimension_semantics = [#tpu.dimension_semantics<parallel>], iteration_bounds = array<i64: 1>, scalar_prefetch = 0 : i64, scratch_operands = 0 : i64, tpu.core_type = #tpu.core_type<tc>, window_params = [{transform_indices = @transform_0, window_bounds = array<i64: 2, 32>}, {transform_indices = @transform_1, window_bounds = array<i64: 2, 8, 32>}, {transform_indices = @transform_2, window_bounds = array<i64: 2, 8>}, {pipeline_mode = #tpu.pipeline_mode<synchronous>, transform_indices = @transform_3, window_bounds = array<i64: 64, 32>}, {transform_indices = @transform_4, window_bounds = array<i64: 2, 32>}, {transform_indices = @transform_5, window_bounds = array<i64: 2, 128>}]} {
    %c0 = arith.constant 0 : index
    %c0_0 = arith.constant 0 : index
    %0 = vector.load %arg1[%c0, %c0_0] : memref<2x32xf32, #tpu.memory_space<vmem>>, vector<2x32xf32>
    %c0_1 = arith.constant 0 : index
    %c0_2 = arith.constant 0 : index
    %c0_3 = arith.constant 0 : index
    %1 = vector.load %arg2[%c0_1, %c0_2, %c0_3] : memref<2x8x32xf32, #tpu.memory_space<vmem>>, vector<2x8x32xf32>
    %c0_4 = arith.constant 0 : index
    %c0_5 = arith.constant 0 : index
    %2 = vector.load %arg3[%c0_4, %c0_5] : memref<2x8xf32, #tpu.memory_space<vmem>>, vector<2x8xf32>
    %3 = vector.shape_cast %0 : vector<2x32xf32> to vector<2x1x32xf32>
    %4 = vector.broadcast %3 : vector<2x1x32xf32> to vector<2x8x32xf32>
    %5 = arith.mulf %4, %1 : vector<2x8x32xf32>
    %cst = arith.constant dense<0.000000e+00> : vector<2x8xf32>
    %6 = vector.multi_reduction <add>, %5, %cst [2] : vector<2x8x32xf32> to vector<2x8xf32>
    %cst_6 = arith.constant dense<0xFF800000> : vector<2xf32>
    %7 = vector.multi_reduction <maximumf>, %6, %cst_6 [1] : vector<2x8xf32> to vector<2xf32>
    %8 = vector.shape_cast %7 : vector<2xf32> to vector<2x1xf32>
    %9 = vector.broadcast %8 : vector<2x1xf32> to vector<2x8xf32>
    %10 = arith.subf %6, %9 : vector<2x8xf32>
    %11 = math.exp %10 : vector<2x8xf32>
    %12 = arith.mulf %11, %2 : vector<2x8xf32>
    %cst_7 = arith.constant dense<0.000000e+00> : vector<2xf32>
    %13 = vector.multi_reduction <add>, %12, %cst_7 [1] : vector<2x8xf32> to vector<2xf32>
    %14 = vector.shape_cast %13 : vector<2xf32> to vector<2x1xf32>
    %15 = tpu.reciprocal %14 {approx = true} : vector<2x1xf32> -> vector<2x1xf32>
    %16 = vector.broadcast %15 : vector<2x1xf32> to vector<2x8xf32>
    %17 = arith.mulf %12, %16 : vector<2x8xf32>
    %18 = vector.shape_cast %17 : vector<2x8xf32> to vector<2x8x1xf32>
    %19 = vector.broadcast %18 : vector<2x8x1xf32> to vector<2x8x32xf32>
    %20 = arith.mulf %19, %1 : vector<2x8x32xf32>
    %cst_8 = arith.constant dense<0.000000e+00> : vector<2x32xf32>
    %21 = vector.multi_reduction <add>, %20, %cst_8 [1] : vector<2x8x32xf32> to vector<2x32xf32>
    %22 = tpu.concatenate %21, %0 in 1 : vector<2x32xf32>, vector<2x32xf32> -> vector<2x64xf32>
    %23 = arith.truncf %22 : vector<2x64xf32> to vector<2x64xbf16>
    %c0_9 = arith.constant 0 : index
    %c0_10 = arith.constant 0 : index
    %24 = vector.load %arg4[%c0_9, %c0_10] : memref<64x32xbf16, #tpu.memory_space<vmem>>, vector<64x32xbf16>
    %cst_11 = arith.constant dense<0.000000e+00> : vector<2x32xf32>
    %25 = tpu.matmul %23, %24, %cst_11 {dimension_numbers = #tpu.dot_dimension_numbers<[1], [0], [0], [1], [0, 0, 1, 1], [], []>} : vector<2x64xbf16>, vector<64x32xbf16>, vector<2x32xf32> -> vector<2x32xf32>
    %26 = math.tanh %25 : vector<2x32xf32>
    %c0_12 = arith.constant 0 : index
    %c0_13 = arith.constant 0 : index
    %27 = vector.load %arg5[%c0_12, %c0_13] : memref<2x32xf32, #tpu.memory_space<vmem>>, vector<2x32xf32>
    tpu.vector_store %arg5[%c0_12, %c0_13], %26 {strides = array<i32>} : memref<2x32xf32, #tpu.memory_space<vmem>>, vector<2x32xf32>,
    %cst_14 = arith.constant 0.000000e+00 : f32
    %28 = vector.broadcast %cst_14 : f32 to vector<2x120xf32>
    %29 = tpu.concatenate %17, %28 in 1 : vector<2x8xf32>, vector<2x120xf32> -> vector<2x128xf32>
    %c0_15 = arith.constant 0 : index
    %c0_16 = arith.constant 0 : index
    %30 = vector.load %arg6[%c0_15, %c0_16] : memref<2x128xf32, #tpu.memory_space<vmem>>, vector<2x128xf32>
    tpu.vector_store %arg6[%c0_15, %c0_16], %29 {strides = array<i32>} : memref<2x128xf32, #tpu.memory_space<vmem>>, vector<2x128xf32>,
    return
  }
  func.func @transform_0(%arg0: i32) -> (i32, i32) {
    %c0_i32 = arith.constant 0 : i32
    %c0_i32_0 = arith.constant 0 : i32
    return %arg0, %c0_i32 : i32, i32
  }
  func.func @transform_1(%arg0: i32) -> (i32, i32, i32) {
    %c0_i32 = arith.constant 0 : i32
    %c0_i32_0 = arith.constant 0 : i32
    %c0_i32_1 = arith.constant 0 : i32
    return %arg0, %c0_i32, %c0_i32_0 : i32, i32, i32
  }
  func.func @transform_2(%arg0: i32) -> (i32, i32) {
    %c0_i32 = arith.constant 0 : i32
    %c0_i32_0 = arith.constant 0 : i32
    return %arg0, %c0_i32 : i32, i32
  }
  func.func @transform_3(%arg0: i32) -> (i32, i32) {
    %c0_i32 = arith.constant 0 : i32
    %c0_i32_0 = arith.constant 0 : i32
    %c0_i32_1 = arith.constant 0 : i32
    return %c0_i32, %c0_i32_0 : i32, i32
  }
  func.func @transform_4(%arg0: i32) -> (i32, i32) {
    %c0_i32 = arith.constant 0 : i32
    %c0_i32_0 = arith.constant 0 : i32
    return %arg0, %c0_i32 : i32, i32
  }
  func.func @transform_5(%arg0: i32) -> (i32, i32) {
    %c0_i32 = arith.constant 0 : i32
    %c0_i32_0 = arith.constant 0 : i32
    return %arg0, %c0_i32 : i32, i32
  }
}

</mosaic_0001>

<bundles_post_ra>
// kernel: w2word_global_attention.1
= control target key start
LH: loop header
LB: loop body
LE: loop exit
PB: predicated region body
PF: predicated region fallthrough
CT: control target
= control target key end

     0   :  { %11 = vsyncpa [#allocation3], 0  ;;  %v30_v0 = vlaneseq  ;;  %v404_v1 = vmov 1966171168   ;;  %s520_s0 = inlined_call_operand.vmem [shape: f32[2,32], index: 0, kind: input, shape index: {}]   ;;  %s521_s1 = inlined_call_operand.vmem [shape: f32[2,8,32], index: 1, kind: input, shape index: {}]   ;;  %s522_s2 = inlined_call_operand.vmem [shape: f32[2,8], index: 2, kind: input, shape index: {}]   ;;  %s523_s3 = inlined_call_operand.vmem [shape: bf16[64,32], index: 3, kind: input, shape index: {}]   ;;  %s524_s4 = inlined_call_operand.hbm [shape: f32[2,32], index: 4, kind: output, shape index: {0}]   ;;  %s525_s5 = inlined_call_operand.hbm [shape: f32[2,128], index: 5, kind: output, shape index: {1}]  }
   0x1   :  { %v28_v2 = vunpack.c.l.s4 %v404_v1  ;;  %v444_v6 = vld [vmem:[%s520_s0] sm:$0x3] }
   0x2   :  { %v31_v3 = vshrl.u32 %v30_v0, 7  ;;  %v71_v4 = vand.u32 127, %v30_v0 }
   0x3   :  { %v29_v5 = vunpack.c.0.s8 %v28_v2 }
   0x4   :  { %v446_v7 = vsub.s32 %v71_v4, %v31_v3 }
   0x5   :  { %12 = vsyncpa [#allocation5], 0  ;;  %v32_v8 = vsub.s32 %v29_v5, %v31_v3  ;;  %v51_v10 = vsub.s32 0, %v31_v3  ;;  %v452_v13 = vld [vmem:[%s521_s1] sm:$0xff]  ;;  %vm61_vm0 = vcmask 261120   ;;  %v457_v16 = vld [vmem:[%s521_s1 + $0x8] sm:$0xff] }
   0x6   :  { %v25_v22 = vld [vmem:[%s522_s2] sm:$0x3]  ;;  %v94_v23 = vsub.s32 1, %v31_v3  ;;  %vm80_vm1 = vcmask 1041409   ;;  %vm83_vm2 = vcmask 58368   ;;  %v405_v32 = vmov 0  }
   0x7   :  { %v33_v9 = vrot.slane %v444_v6, %v32_v8  ;;  %v108_v31 = vrot.slane %v25_v22, %v51_v10  ;;  %342 = vset.pattern.permute.xlu1 %v405_v32  ;;  %343 = vset.pattern.permute.xlu0 %v405_v32  ;;  %v344_v58 = vld [vmem:[%s523_s3] sm:$0xff]   ;;  %s406_s25 = smov 32   ;;  %v407_v59 = vmov 0.0   ;;  %v345_v60 = vld [vmem:[%s523_s3 + $0x8] sm:$0xff]   ;;  %v346_v61 = vld [vmem:[%s523_s3 + $0x10] sm:$0xff]   ;;  %vm408_vm3 = vmmov 0  }
   0x8   :  { %v115_v24 = vrot.slane %v25_v22, %v94_v23  ;;  %323 = vmatprep.subr.bf16.mxu0 %v407_v59  ;;  %v347_v62 = vld [vmem:[%s523_s3 + $0x18] sm:$0xff]   ;;  %331 = vmatprep.mubr.msk.bf16.mxu0 %vm408_vm3, %v407_v59  ;;  %vm282_vm4 = vcmask 64512   ;;  %vm225_vm5 = vcmask 523264   ;;  %s409_s3 = smov [#allocation4]  }
   0x9   :  { %v41_v11 = vrot.slane %v33_v9, %v32_v8  ;;  %v34_v12 = vcombine.high %v33_v9, %v33_v9  ;;  %324 = vmatpush3.bf16.msra.mxu0 %v344_v58  ;;  %s301_s7 = sshll.u32 %s409_s3, 4  ;;  %s302_s7 = int_to_ptr.vmem [resolvable:$true] %s301_s7 }
   0xa   :  { %325 = vmatprep.subr.bf16.mxu0 %v407_v59  ;;  %s356_s8 = scalar_lea.vmem %s302_s7, 32  ;;  %p361_p1 = scmp.lt.s32.totalorder %s302_s7, %s302_s7 }
   0xb   :  { %v52_v14 = vrot.slane %v41_v11, %v51_v10  ;;  %v48_v15 = vrot.slane %v34_v12, %v32_v8  ;;  %p357_p0 = scmp.ne.s32.totalorder %s302_s7, %s356_s8  ;;  %p362_p2 = scmp.lt.s32.totalorder %s356_s8, %s356_s8 }
   0xd   :  { %v59_v17 = vmul.f32 %v52_v14, %v452_v13  ;;  %v56_v18 = vrot.slane %v48_v15, %v51_v10  ;;  %326 = vmatpush3.bf16.msra.mxu0 %v345_v60  ;;  %p363_p3 = por %p362_p2, %p361_p1 }
   0xe   :  { %327 = vmatprep.subr.bf16.mxu0 %v407_v59 }
   0xf   :  { %v62_v19 = vsel %vm61_vm0, %v59_v17, 0.0  ;;  %v60_v20 = vmul.f32 %v56_v18, %v457_v16  ;;  %p364_p4 = pnand %p363_p3, %p357_p0 }
  0x10   :  { %63 = vadd.xlane.f32.xlu0 %v62_v19 }
  0x11   :  { %v65_v21 = vsel %vm61_vm0, %v60_v20, 0.0  ;;  %328 = vmatpush3.bf16.msra.mxu0 %v346_v61 }
  0x12   :  { %329 = vmatprep.subr.bf16.mxu0 %v407_v59 }
  0x14   :  { %66 = vadd.xlane.f32.xlu0 %v65_v21 }
  0x15   :  { %330 = vmatpush3.bf16.msra.mxu0 %v347_v62 }
  0x2a   :  { %117 = vbcast.lane.b32.xlu0 %v115_v24, 256 }
  0x9d   :  { %v64_v25 = vpop.xlane.xlu0 %63 }
  0x9e   :  { %v75_v27 = vrot.slane %v64_v25, %v446_v7 }
  0xa1   :  { %v67_v26 = vpop.xlane.xlu0 %66 }
  0xa2   :  { %v79_v28 = vrot.slane %v67_v26, %v446_v7 }
  0xa4   :  { %v81_v29 = vsel %vm80_vm1, %v79_v28, %v75_v27 }
  0xa5   :  { %v84_v30 = vsel %vm83_vm2, %v81_v29, -inf  ;;  %v118_v44 = vpop.permute.xlu0 %117 }
  0xa6   :  { %85 = vmax.xlane.f32.xlu1 %v84_v30 }
  0xb7   :  { %110 = vbcast.lane.b32.xlu1 %v108_v31, 256 }
 0x133   :  { %v86_v33 = vpop.xlane.xlu1 %85 }
 0x134   :  { %v91_v34 = vrot.slane %v86_v33, %v51_v10  ;;  %v95_v35 = vrot.slane %v86_v33, %v94_v23 }
 0x136   :  { %v98_v36 = vsub.f32 %v64_v25, %v91_v34  ;;  %v99_v37 = vsub.f32 %v67_v26, %v95_v35 }
 0x137   :  { %v111_v40 = vpop.permute.xlu1 %110 }
 0x138   :  { %v100_v38 = vmul.f32 1.442695, %v98_v36  ;;  %v102_v39 = vmul.f32 1.442695, %v99_v37 }
 0x13a   :  { %348 = vpow2.f32 %v100_v38 }
 0x13b   :  { %350 = vpow2.f32 %v102_v39 }
 0x144   :  { %v349_v41 = vpop.eup %348 }
 0x145   :  { %v121_v42 = vmul.f32 %v349_v41, %v111_v40  ;;  %v351_v43 = vpop.eup %350 }
 0x146   :  { %v122_v45 = vmul.f32 %v351_v43, %v118_v44 }
 0x147   :  { %126 = vperm.xlu1 %342, %v121_v42  }
 0x14b   :  { %129 = vperm.xlu1 %342, %v122_v45  }
 0x1c6   :  { %v127_v46 = vpop.permute.xlu1 %126 }
 0x1c7   :  { %v134_v48 = vrot.slane %v127_v46, %v446_v7 }
 0x1ca   :  { %v130_v47 = vpop.permute.xlu1 %129 }
 0x1cb   :  { %v138_v49 = vrot.slane %v130_v47, %v446_v7 }
 0x1cd   :  { %v139_v50 = vsel %vm80_vm1, %v138_v49, %v134_v48 }
 0x1ce   :  { %v141_v51 = vsel %vm83_vm2, %v139_v50, 0.0 }
 0x1cf   :  { %142 = vadd.xlane.f32.xlu1 %v141_v51 }
 0x25c   :  { %v143_v52 = vpop.xlane.xlu1 %142 }
 0x25d   :  { %352 = vrcp.f32 %v143_v52 }
 0x267   :  { %v353_v53 = vpop.eup %352 }
 0x268   :  { %v149_v54 = vrot.slane %v353_v53, %v51_v10  ;;  %v153_v56 = vrot.slane %v353_v53, %v94_v23 }
 0x26a   :  { %v156_v55 = vmul.f32 %v149_v54, %v121_v42  ;;  %v157_v57 = vmul.f32 %v153_v56, %v122_v45 }
 0x26c   :  { %160 = vperm.xlu0 %343, %v156_v55  }
 0x270   :  { %165 = vperm.xlu0 %343, %v157_v57  }
 0x274   :  { %188 = vrot.lane.b32.xlu0 %v444_v6, %s406_s25 }
 0x2eb   :  { %v161_v63 = vpop.permute.xlu0 %160 }
 0x2ec   :  { %v168_v0 = vmul.f32 %v161_v63, %v452_v13  ;;  %v275_v4 = vrot.slane %v161_v63, %v446_v7 }
 0x2ee   :  { %v170_v1 = vsel %vm61_vm0, %v168_v0, 0.0 }
 0x2ef   :  { %v171_v2 = vrot.slane %v170_v1, 4  ;;  %v166_v3 = vpop.permute.xlu0 %165 }
 0x2f0   :  { %v169_v5 = vmul.f32 %v166_v3, %v457_v16  ;;  %v279_v6 = vrot.slane %v166_v3, %v446_v7 }
 0x2f1   :  { %v172_v8 = vadd.f32 %v171_v2, %v170_v1 }
 0x2f2   :  { %v177_v9 = vsel %vm61_vm0, %v169_v5, 0.0  ;;  %v280_v10 = vsel %vm80_vm1, %v279_v6, %v275_v4 }
 0x2f3   :  { %v173_v11 = vrot.slane %v172_v8, 2  ;;  %v178_v12 = vrot.slane %v177_v9, 4  ;;  %v283_v14 = vsel %vm282_vm4, %v280_v10, 0.0  ;;  %v189_v22 = vpop.permute.xlu0 %188 }
 0x2f4   :  { %284 = vst [vmem:[#allocation4] sm:$0x3] %v283_v14 }
 0x2f5   :  { %v174_v13 = vadd.f32 %v173_v11, %v172_v8  ;;  %v179_v15 = vadd.f32 %v178_v12, %v177_v9 }
 0x2f7   :  { %v180_v17 = vrot.slane %v179_v15, 2  ;;  %v175_v18 = vrot.slane %v174_v13, 1 }
 0x2f9   :  { %v181_v19 = vadd.f32 %v180_v17, %v179_v15  ;;  %v176_v21 = vadd.f32 %v175_v18, %v174_v13 }
 0x2fb   :  { %v182_v20 = vrot.slane %v181_v19, 1 }
 0x2fd   :  { %v183_v16 = vadd.f32 %v182_v20, %v181_v19 }
 0x2ff   :  { %v186_v7 = vsel %vm80_vm1, %v183_v16, %v176_v21 }
 0x300   :  { %v191_v23 = vsel %vm61_vm0, %v186_v7, %v189_v22 }
 0x301   :  { %v192_v24 = vpack.c.bf16 %v191_v23, %v191_v23 }
 0x303   :  { %332 = vmatmul.mubr.msk.bf16.vlgmr.msra.gmra.mrb[0].mxu0 %vm225_vm5, %v192_v24 }
 0x304   :  { %367 = shalt.err (!%p364_p4)
}
 0x305   :  { %s368_s11 = scalar_lea.hbm %s525_s5, 32 }
 0x306   :  { %p369_p5 = scmp.ne.s32.totalorder %s525_s5, %s368_s11  ;;  %p372_p6 = scmp.lt.u32.totalorder %s368_s11, %s525_s5 }
 0x308   :  { %p374_p7 = pnand %p372_p6, %p369_p5 }
 0x30a   :  { %377 = shalt.err (!%p374_p7)
}
 0x30b   :  { %304 = dma.vmem_to_hbm [thread:$0]  %s302_s7, 32, %s525_s5, [#allocation5]   ;;  %vm270_vm6 = vcmask 254976  }
 0x30c   :  { %s410_s18 = smov [#allocation2]  }
 0x30d   :  { %s291_s19 = sshll.u32 %s410_s18, 4  ;;  %s292_s19 = int_to_ptr.vmem [resolvable:$true] %s291_s19 }
 0x30e   :  { %s378_s20 = scalar_lea.vmem %s292_s19, 32  ;;  %p383_p9 = scmp.lt.s32.totalorder %s292_s19, %s292_s19 }
 0x30f   :  { %p379_p8 = scmp.ne.s32.totalorder %s292_s19, %s378_s20  ;;  %p384_p10 = scmp.lt.s32.totalorder %s378_s20, %s378_s20 }
 0x311   :  { %p385_p11 = por %p384_p10, %p383_p9 }
 0x313   :  { %p386_p12 = pnand %p385_p11, %p379_p8 }
 0x3d6   :  { %v263_v25 = vpop.f32.mrb[0].mxu0 }
 0x3d7   :  { %354 = vtanh.f32 %v263_v25  ;;  %v333_v26 = vpop.f32.mrb[1].mxu0 }
 0x3d8   :  { %v266_v27 = vpop.f32.mrb[2].mxu0 }
 0x3d9   :  { %v334_v28 = vpop.f32.mrb[3].mxu0 }
 0x3e1   :  { %v355_v29 = vpop.eup %354 }
 0x3e2   :  { %271 = vst.msk [vmem:[#allocation2] sm:$0x3] %vm270_vm6, %v355_v29 }
 0x3e3   :  { %389 = shalt.err (!%p386_p12)
}
 0x3e4   :  { %s390_s22 = scalar_lea.hbm %s524_s4, 32 }
 0x3e5   :  { %p391_p13 = scmp.ne.s32.totalorder %s524_s4, %s390_s22  ;;  %p394_p0 = scmp.lt.u32.totalorder %s390_s22, %s524_s4 }
 0x3e7   :  { %p396_p1 = pnand %p394_p0, %p391_p13 }
 0x3e9   :  { %399 = shalt.err (!%p396_p1)
}
 0x3ea   :  { %294 = dma.vmem_to_hbm [thread:$0]  %s292_s19, 32, %s524_s4, [#allocation3]  }
 0x3eb   :  { %400 = dma.done.wait [#allocation3], 32  }
 0x3ec   :  { %401 = vsyncadd [#allocation3], 4294967264 }
 0x3ed   :  { %402 = dma.done.wait [#allocation5], 32  }
 0x3ee   :  { %403 = vsyncadd [#allocation5], 4294967264 }
 0x3ef   :  { %311 = vsyncpa [#allocation3], 1 }
 0x3f0   :  { %312 = vsyncpa [#allocation5], 1 }

</bundles_post_ra>
